<compile_context>
chip_gen: v7x
topology: tpu7x:2x2x1
jax: 0.10.0
libtpu: 0.0.40
codegen_flags: <defaults>
</compile_context>

<pallas_src>
import math

import jax
import jax.numpy as jnp
from jax.experimental import pallas as pl
from jax.experimental.pallas import tpu as pltpu

LAYERS = [29, 26, 20, 15, 10, 5, 2]
NUM_LIN = len(LAYERS) - 1          # 6 linear layers
NEG_SLOPE = 0.01                   # torch.nn.LeakyReLU default
F_PAD = 32                         # padded input-feature width (29 -> 32)
H_PAD = 128                        # padded hidden width (lane-dense)
OUT_DIM = LAYERS[-1]               # 2
DEFAULT_TILE_B = 2048              # batch rows per grid step


def _round_up(n, m):
    return ((n + m - 1) // m) * m


def _leaky_relu(v):
    return jnp.where(v >= 0, v, NEG_SLOPE * v)


# -----------------------------------------------------------------------------
# Main tiled kernel: x tile -> pre-softmax logits tile.
# -----------------------------------------------------------------------------
def mlp_logits_kernel(x_ref, w_ref, b_ref, o_ref):
    # x_ref: (TILE_B, F_PAD)   w_ref: (6, 128, 128)   b_ref: (6, 8, 128)
    h = x_ref[...]

    # Layer 0: (TILE_B, 32) @ (32, 128).  Padded rows/cols of the slabs are 0,
    # so padded activation lanes stay exactly 0 through every layer.
    w0 = w_ref[0][:F_PAD, :]
    h = jnp.dot(h, w0, preferred_element_type=jnp.float32) + b_ref[0][0:1, :]
    h = _leaky_relu(h)

    # Layers 1..4: uniform (TILE_B, 128) @ (128, 128) + LeakyReLU.
    for l in range(1, NUM_LIN - 1):
        h = jnp.dot(h, w_ref[l], preferred_element_type=jnp.float32) + b_ref[l][0:1, :]
        h = _leaky_relu(h)

    # Final linear.  The dim=0 softmax needs ALL batch rows, so it runs in a
    # separate global epilogue kernel, not per-tile (would be silently wrong).
    logits = (jnp.dot(h, w_ref[NUM_LIN - 1], preferred_element_type=jnp.float32)
              + b_ref[NUM_LIN - 1][0:1, :])
    o_ref[...] = logits[:, :OUT_DIM]


# -----------------------------------------------------------------------------
# Epilogue: softmax over dim=0 (batch axis) on the tiny (B, 2) logits.
# -----------------------------------------------------------------------------
def softmax_dim0_kernel(z_ref, o_ref):
    z = z_ref[...]
    m = jnp.max(z, axis=0, keepdims=True)
    e = jnp.exp(z - m)
    denom = jnp.sum(e, axis=0, keepdims=True)
    # exact reciprocal keeps the tight 1e-5 check; approx=True (EUP) works too
    o_ref[...] = e * pl.reciprocal(denom, approx=False)


def _softmax_dim0(z):
    vmem = pl.BlockSpec(memory_space=pltpu.MemorySpace.VMEM)
    return pl.pallas_call(
        softmax_dim0_kernel,
        out_shape=jax.ShapeDtypeStruct(z.shape, jnp.float32),
        in_specs=[vmem],
        out_specs=vmem,
    )(z)


# -----------------------------------------------------------------------------
# Wrapper
# -----------------------------------------------------------------------------
def pack_params(params):
    """Pack list of (W_(in,out), b_(1,out)) pairs into two zero-padded slabs."""
    w_slab = jnp.zeros((NUM_LIN, H_PAD, H_PAD), jnp.float32)
    b_slab = jnp.zeros((NUM_LIN, 8, H_PAD), jnp.float32)
    for l, (w, b) in enumerate(params):
        w_slab = w_slab.at[l, :w.shape[0], :w.shape[1]].set(w)
        b_slab = b_slab.at[l, 0, :b.shape[-1]].set(b.reshape(-1))
    return w_slab, b_slab


def network_forward(x, w_slab, b_slab, *, tile_b=DEFAULT_TILE_B):
    """x: (B, 29) float32 -> (B, 2) softmax(dim=0) output."""
    B, F = x.shape
    assert F == LAYERS[0]

    tb = min(tile_b, _round_up(B, 8))          # tile rows (multiple of 8)
    b_pad = _round_up(B, tb)
    x_pad = jnp.pad(x.astype(jnp.float32), ((0, b_pad - B), (0, F_PAD - F)))

    grid = (b_pad // tb,)
    logits = pl.pallas_call(
        mlp_logits_kernel,
        out_shape=jax.ShapeDtypeStruct((b_pad, OUT_DIM), jnp.float32),
        grid_spec=pltpu.PrefetchScalarGridSpec(
            num_scalar_prefetch=0,
            grid=grid,
            in_specs=[
                pl.BlockSpec((tb, F_PAD), lambda i: (i, 0)),                 # streamed
                pl.BlockSpec((NUM_LIN, H_PAD, H_PAD), lambda i: (0, 0, 0)),  # resident
                pl.BlockSpec((NUM_LIN, 8, H_PAD), lambda i: (0, 0, 0)),      # resident
            ],
            out_specs=pl.BlockSpec((tb, OUT_DIM), lambda i: (i, 0)),
        ),
        compiler_params=pltpu.CompilerParams(
            dimension_semantics=("parallel",),    # megacore sharding on v7x
        ),
    )(x_pad, w_slab, b_slab)

    # drop batch padding, then GLOBAL dim=0 softmax over all B rows
    return _softmax_dim0(logits[:B])


# -----------------------------------------------------------------------------
# Deterministic init mirroring the PyTorch __init__, and a pure-JAX reference.
# -----------------------------------------------------------------------------
def init_params(key):
    """Layers 1-5: kaiming_uniform_ (a=0, fan_in) weights, bias = 0.01.
    Layer 6: default nn.Linear uniform(+-1/sqrt(fan_in)) weights, bias = 0.
    Weights are produced already transposed to (in, out)."""
    params = []
    keys = jax.random.split(key, NUM_LIN)
    for i in range(NUM_LIN):
        fan_in, fan_out = LAYERS[i], LAYERS[i + 1]
        if i < NUM_LIN - 1:
            bound = math.sqrt(6.0 / fan_in)    # kaiming_uniform_, a=0
            bias_val = 0.01
        else:
            bound = 1.0 / math.sqrt(fan_in)    # default nn.Linear init
            bias_val = 0.0
        w = jax.random.uniform(keys[i], (fan_in, fan_out),
                               minval=-bound, maxval=bound, dtype=jnp.float32)
        b = jnp.full((1, fan_out), bias_val, dtype=jnp.float32)
        params.append((w, b))
    return params


def reference_forward(x, params):
    h = x
    for i, (w, b) in enumerate(params):
        h = h @ w + b
        if i < len(params) - 1:
            h = _leaky_relu(h)
    m = jnp.max(h, axis=0, keepdims=True)
    e = jnp.exp(h - m)
    return e / jnp.sum(e, axis=0, keepdims=True)


if __name__ == "__main__":
    key = jax.random.PRNGKey(0)
    k_x, k_p, k_x2 = jax.random.split(key, 3)

    params = init_params(k_p)
    w_slab, b_slab = pack_params(params)

    # Small batch (single tile, matches the module's tiny widths).
    B = 8
    x = jax.random.normal(k_x, (B, LAYERS[0]), dtype=jnp.float32)
    out = jax.block_until_ready(network_forward(x, w_slab, b_slab))
    ref = reference_forward(x, params)
    assert out.shape == (B, LAYERS[-1])
    assert jnp.allclose(out, ref, atol=1e-5, rtol=1e-5), "mismatch vs reference (B=8)"
    assert jnp.allclose(jnp.sum(out, axis=0), jnp.ones(LAYERS[-1]), atol=1e-5)

    # Multi-tile path: exercises grid > 1, resident params, and batch padding.
    B2 = 200
    x2 = jax.random.normal(k_x2, (B2, LAYERS[0]), dtype=jnp.float32)
    out2 = jax.block_until_ready(network_forward(x2, w_slab, b_slab, tile_b=64))
    ref2 = reference_forward(x2, params)
    assert out2.shape == (B2, LAYERS[-1])
    assert jnp.allclose(out2, ref2, atol=1e-5, rtol=1e-5), "mismatch vs reference (B=200)"
    assert jnp.allclose(jnp.sum(out2, axis=0), jnp.ones(LAYERS[-1]), atol=1e-5)

    print("KERNEL_OK")
</pallas_src>

<mosaic_0001>
module attributes {stable_mosaic.version = 11 : i64} {
  func.func @mlp_logits_kernel(%arg0: i32, %arg1: memref<8x32xf32, #tpu.memory_space<vmem>>, %arg2: memref<6x128x128xf32, #tpu.memory_space<vmem>>, %arg3: memref<6x8x128xf32, #tpu.memory_space<vmem>>, %arg4: memref<8x2xf32, #tpu.memory_space<vmem>>) attributes {dimension_semantics = [#tpu.dimension_semantics<parallel>], iteration_bounds = array<i64: 1>, scalar_prefetch = 0 : i64, scratch_operands = 0 : i64, tpu.core_type = #tpu.core_type<tc>, window_params = [{transform_indices = @transform_0, window_bounds = array<i64: 8, 32>}, {pipeline_mode = #tpu.pipeline_mode<synchronous>, transform_indices = @transform_1, window_bounds = array<i64: 6, 128, 128>}, {pipeline_mode = #tpu.pipeline_mode<synchronous>, transform_indices = @transform_2, window_bounds = array<i64: 6, 8, 128>}, {transform_indices = @transform_3, window_bounds = array<i64: 8, 2>}]} {
    %c0 = arith.constant 0 : index
    %c0_0 = arith.constant 0 : index
    %0 = vector.load %arg1[%c0, %c0_0] : memref<8x32xf32, #tpu.memory_space<vmem>>, vector<8x32xf32>
    %c0_1 = arith.constant 0 : index
    %c0_2 = arith.constant 0 : index
    %c0_3 = arith.constant 0 : index
    %1 = vector.load %arg2[%c0_1, %c0_2, %c0_3] : memref<6x128x128xf32, #tpu.memory_space<vmem>>, vector<1x128x128xf32>
    %2 = vector.shape_cast %1 : vector<1x128x128xf32> to vector<128x128xf32>
    %3 = vector.extract_strided_slice %2 {offsets = [0, 0], sizes = [32, 128], strides = [1, 1]} : vector<128x128xf32> to vector<32x128xf32>
    %cst = arith.constant dense<0.000000e+00> : vector<8x128xf32>
    %4 = tpu.matmul %0, %3, %cst {dimension_numbers = #tpu.dot_dimension_numbers<[1], [0], [0], [1], [0, 0, 1, 1], [], []>} : vector<8x32xf32>, vector<32x128xf32>, vector<8x128xf32> -> vector<8x128xf32>
    %c0_4 = arith.constant 0 : index
    %c0_5 = arith.constant 0 : index
    %c0_6 = arith.constant 0 : index
    %5 = vector.load %arg3[%c0_4, %c0_5, %c0_6] : memref<6x8x128xf32, #tpu.memory_space<vmem>>, vector<1x8x128xf32>
    %6 = vector.shape_cast %5 : vector<1x8x128xf32> to vector<8x128xf32>
    %7 = vector.extract_strided_slice %6 {offsets = [0, 0], sizes = [1, 128], strides = [1, 1]} : vector<8x128xf32> to vector<1x128xf32>
    %8 = vector.broadcast %7 : vector<1x128xf32> to vector<8x128xf32>
    %9 = arith.addf %4, %8 : vector<8x128xf32>
    %cst_7 = arith.constant 0.000000e+00 : f32
    %10 = vector.broadcast %cst_7 : f32 to vector<8x128xf32>
    %11 = arith.cmpf oge, %9, %10 : vector<8x128xf32>
    %cst_8 = arith.constant 0.00999999977 : f32
    %12 = vector.broadcast %cst_8 : f32 to vector<8x128xf32>
    %13 = arith.mulf %12, %9 : vector<8x128xf32>
    %14 = arith.select %11, %9, %13 : vector<8x128xi1>, vector<8x128xf32>
    %c1 = arith.constant 1 : index
    %c0_9 = arith.constant 0 : index
    %c0_10 = arith.constant 0 : index
    %15 = vector.load %arg2[%c1, %c0_9, %c0_10] : memref<6x128x128xf32, #tpu.memory_space<vmem>>, vector<1x128x128xf32>
    %16 = vector.shape_cast %15 : vector<1x128x128xf32> to vector<128x128xf32>
    %cst_11 = arith.constant dense<0.000000e+00> : vector<8x128xf32>
    %17 = tpu.matmul %14, %16, %cst_11 {dimension_numbers = #tpu.dot_dimension_numbers<[1], [0], [0], [1], [0, 0, 1, 1], [], []>} : vector<8x128xf32>, vector<128x128xf32>, vector<8x128xf32> -> vector<8x128xf32>
    %c1_12 = arith.constant 1 : index
    %c0_13 = arith.constant 0 : index
    %c0_14 = arith.constant 0 : index
    %18 = vector.load %arg3[%c1_12, %c0_13, %c0_14] : memref<6x8x128xf32, #tpu.memory_space<vmem>>, vector<1x8x128xf32>
    %19 = vector.shape_cast %18 : vector<1x8x128xf32> to vector<8x128xf32>
    %20 = vector.extract_strided_slice %19 {offsets = [0, 0], sizes = [1, 128], strides = [1, 1]} : vector<8x128xf32> to vector<1x128xf32>
    %21 = vector.broadcast %20 : vector<1x128xf32> to vector<8x128xf32>
    %22 = arith.addf %17, %21 : vector<8x128xf32>
    %cst_15 = arith.constant 0.000000e+00 : f32
    %23 = vector.broadcast %cst_15 : f32 to vector<8x128xf32>
    %24 = arith.cmpf oge, %22, %23 : vector<8x128xf32>
    %cst_16 = arith.constant 0.00999999977 : f32
    %25 = vector.broadcast %cst_16 : f32 to vector<8x128xf32>
    %26 = arith.mulf %25, %22 : vector<8x128xf32>
    %27 = arith.select %24, %22, %26 : vector<8x128xi1>, vector<8x128xf32>
    %c2 = arith.constant 2 : index
    %c0_17 = arith.constant 0 : index
    %c0_18 = arith.constant 0 : index
    %28 = vector.load %arg2[%c2, %c0_17, %c0_18] : memref<6x128x128xf32, #tpu.memory_space<vmem>>, vector<1x128x128xf32>
    %29 = vector.shape_cast %28 : vector<1x128x128xf32> to vector<128x128xf32>
    %cst_19 = arith.constant dense<0.000000e+00> : vector<8x128xf32>
    %30 = tpu.matmul %27, %29, %cst_19 {dimension_numbers = #tpu.dot_dimension_numbers<[1], [0], [0], [1], [0, 0, 1, 1], [], []>} : vector<8x128xf32>, vector<128x128xf32>, vector<8x128xf32> -> vector<8x128xf32>
    %c2_20 = arith.constant 2 : index
    %c0_21 = arith.constant 0 : index
    %c0_22 = arith.constant 0 : index
    %31 = vector.load %arg3[%c2_20, %c0_21, %c0_22] : memref<6x8x128xf32, #tpu.memory_space<vmem>>, vector<1x8x128xf32>
    %32 = vector.shape_cast %31 : vector<1x8x128xf32> to vector<8x128xf32>
    %33 = vector.extract_strided_slice %32 {offsets = [0, 0], sizes = [1, 128], strides = [1, 1]} : vector<8x128xf32> to vector<1x128xf32>
    %34 = vector.broadcast %33 : vector<1x128xf32> to vector<8x128xf32>
    %35 = arith.addf %30, %34 : vector<8x128xf32>
    %cst_23 = arith.constant 0.000000e+00 : f32
    %36 = vector.broadcast %cst_23 : f32 to vector<8x128xf32>
    %37 = arith.cmpf oge, %35, %36 : vector<8x128xf32>
    %cst_24 = arith.constant 0.00999999977 : f32
    %38 = vector.broadcast %cst_24 : f32 to vector<8x128xf32>
    %39 = arith.mulf %38, %35 : vector<8x128xf32>
    %40 = arith.select %37, %35, %39 : vector<8x128xi1>, vector<8x128xf32>
    %c3 = arith.constant 3 : index
    %c0_25 = arith.constant 0 : index
    %c0_26 = arith.constant 0 : index
    %41 = vector.load %arg2[%c3, %c0_25, %c0_26] : memref<6x128x128xf32, #tpu.memory_space<vmem>>, vector<1x128x128xf32>
    %42 = vector.shape_cast %41 : vector<1x128x128xf32> to vector<128x128xf32>
    %cst_27 = arith.constant dense<0.000000e+00> : vector<8x128xf32>
    %43 = tpu.matmul %40, %42, %cst_27 {dimension_numbers = #tpu.dot_dimension_numbers<[1], [0], [0], [1], [0, 0, 1, 1], [], []>} : vector<8x128xf32>, vector<128x128xf32>, vector<8x128xf32> -> vector<8x128xf32>
    %c3_28 = arith.constant 3 : index
    %c0_29 = arith.constant 0 : index
    %c0_30 = arith.constant 0 : index
    %44 = vector.load %arg3[%c3_28, %c0_29, %c0_30] : memref<6x8x128xf32, #tpu.memory_space<vmem>>, vector<1x8x128xf32>
    %45 = vector.shape_cast %44 : vector<1x8x128xf32> to vector<8x128xf32>
    %46 = vector.extract_strided_slice %45 {offsets = [0, 0], sizes = [1, 128], strides = [1, 1]} : vector<8x128xf32> to vector<1x128xf32>
    %47 = vector.broadcast %46 : vector<1x128xf32> to vector<8x128xf32>
    %48 = arith.addf %43, %47 : vector<8x128xf32>
    %cst_31 = arith.constant 0.000000e+00 : f32
    %49 = vector.broadcast %cst_31 : f32 to vector<8x128xf32>
    %50 = arith.cmpf oge, %48, %49 : vector<8x128xf32>
    %cst_32 = arith.constant 0.00999999977 : f32
    %51 = vector.broadcast %cst_32 : f32 to vector<8x128xf32>
    %52 = arith.mulf %51, %48 : vector<8x128xf32>
    %53 = arith.select %50, %48, %52 : vector<8x128xi1>, vector<8x128xf32>
    %c4 = arith.constant 4 : index
    %c0_33 = arith.constant 0 : index
    %c0_34 = arith.constant 0 : index
    %54 = vector.load %arg2[%c4, %c0_33, %c0_34] : memref<6x128x128xf32, #tpu.memory_space<vmem>>, vector<1x128x128xf32>
    %55 = vector.shape_cast %54 : vector<1x128x128xf32> to vector<128x128xf32>
    %cst_35 = arith.constant dense<0.000000e+00> : vector<8x128xf32>
    %56 = tpu.matmul %53, %55, %cst_35 {dimension_numbers = #tpu.dot_dimension_numbers<[1], [0], [0], [1], [0, 0, 1, 1], [], []>} : vector<8x128xf32>, vector<128x128xf32>, vector<8x128xf32> -> vector<8x128xf32>
    %c4_36 = arith.constant 4 : index
    %c0_37 = arith.constant 0 : index
    %c0_38 = arith.constant 0 : index
    %57 = vector.load %arg3[%c4_36, %c0_37, %c0_38] : memref<6x8x128xf32, #tpu.memory_space<vmem>>, vector<1x8x128xf32>
    %58 = vector.shape_cast %57 : vector<1x8x128xf32> to vector<8x128xf32>
    %59 = vector.extract_strided_slice %58 {offsets = [0, 0], sizes = [1, 128], strides = [1, 1]} : vector<8x128xf32> to vector<1x128xf32>
    %60 = vector.broadcast %59 : vector<1x128xf32> to vector<8x128xf32>
    %61 = arith.addf %56, %60 : vector<8x128xf32>
    %cst_39 = arith.constant 0.000000e+00 : f32
    %62 = vector.broadcast %cst_39 : f32 to vector<8x128xf32>
    %63 = arith.cmpf oge, %61, %62 : vector<8x128xf32>
    %cst_40 = arith.constant 0.00999999977 : f32
    %64 = vector.broadcast %cst_40 : f32 to vector<8x128xf32>
    %65 = arith.mulf %64, %61 : vector<8x128xf32>
    %66 = arith.select %63, %61, %65 : vector<8x128xi1>, vector<8x128xf32>
    %c5 = arith.constant 5 : index
    %c0_41 = arith.constant 0 : index
    %c0_42 = arith.constant 0 : index
    %67 = vector.load %arg2[%c5, %c0_41, %c0_42] : memref<6x128x128xf32, #tpu.memory_space<vmem>>, vector<1x128x128xf32>
    %68 = vector.shape_cast %67 : vector<1x128x128xf32> to vector<128x128xf32>
    %cst_43 = arith.constant dense<0.000000e+00> : vector<8x128xf32>
    %69 = tpu.matmul %66, %68, %cst_43 {dimension_numbers = #tpu.dot_dimension_numbers<[1], [0], [0], [1], [0, 0, 1, 1], [], []>} : vector<8x128xf32>, vector<128x128xf32>, vector<8x128xf32> -> vector<8x128xf32>
    %c5_44 = arith.constant 5 : index
    %c0_45 = arith.constant 0 : index
    %c0_46 = arith.constant 0 : index
    %70 = vector.load %arg3[%c5_44, %c0_45, %c0_46] : memref<6x8x128xf32, #tpu.memory_space<vmem>>, vector<1x8x128xf32>
    %71 = vector.shape_cast %70 : vector<1x8x128xf32> to vector<8x128xf32>
    %72 = vector.extract_strided_slice %71 {offsets = [0, 0], sizes = [1, 128], strides = [1, 1]} : vector<8x128xf32> to vector<1x128xf32>
    %73 = vector.broadcast %72 : vector<1x128xf32> to vector<8x128xf32>
    %74 = arith.addf %69, %73 : vector<8x128xf32>
    %75 = vector.extract_strided_slice %74 {offsets = [0, 0], sizes = [8, 2], strides = [1, 1]} : vector<8x128xf32> to vector<8x2xf32>
    %c0_47 = arith.constant 0 : index
    %c0_48 = arith.constant 0 : index
    %76 = vector.load %arg4[%c0_47, %c0_48] : memref<8x2xf32, #tpu.memory_space<vmem>>, vector<8x2xf32>
    tpu.vector_store %arg4[%c0_47, %c0_48], %75 {strides = array<i32>} : memref<8x2xf32, #tpu.memory_space<vmem>>, vector<8x2xf32>,
    return
  }
  func.func @transform_0(%arg0: i32) -> (i32, i32) {
    %c0_i32 = arith.constant 0 : i32
    %c0_i32_0 = arith.constant 0 : i32
    return %arg0, %c0_i32 : i32, i32
  }
  func.func @transform_1(%arg0: i32) -> (i32, i32, i32) {
    %c0_i32 = arith.constant 0 : i32
    %c0_i32_0 = arith.constant 0 : i32
    %c0_i32_1 = arith.constant 0 : i32
    %c0_i32_2 = arith.constant 0 : i32
    return %c0_i32, %c0_i32_0, %c0_i32_1 : i32, i32, i32
  }
  func.func @transform_2(%arg0: i32) -> (i32, i32, i32) {
    %c0_i32 = arith.constant 0 : i32
    %c0_i32_0 = arith.constant 0 : i32
    %c0_i32_1 = arith.constant 0 : i32
    %c0_i32_2 = arith.constant 0 : i32
    return %c0_i32, %c0_i32_0, %c0_i32_1 : i32, i32, i32
  }
  func.func @transform_3(%arg0: i32) -> (i32, i32) {
    %c0_i32 = arith.constant 0 : i32
    %c0_i32_0 = arith.constant 0 : i32
    return %arg0, %c0_i32 : i32, i32
  }
}

</mosaic_0001>

<bundles_post_ra>
// kernel: tpu_custom_call.1
= control target key start
LH: loop header
LB: loop body
LE: loop exit
PB: predicated region body
PF: predicated region fallthrough
CT: control target
= control target key end

     0   :  { %8 = vsyncpa [#allocation3], 0  ;;  %s1241_s0 = inlined_call_operand.hbm [shape: f32[8,32], index: 0, kind: input, shape index: {}]   ;;  %s1242_s1 = inlined_call_operand.hbm [shape: f32[6,128,128], index: 1, kind: input, shape index: {}]   ;;  %s1243_s2 = inlined_call_operand.hbm [shape: f32[6,8,128], index: 2, kind: input, shape index: {}]   ;;  %s1244_s3 = inlined_call_operand.vmem [shape: f32[8,2], index: 3, kind: output, shape index: {}]  }
   0x1   :  { %9 = vsyncpa [#allocation5], 0  ;;  %s1106_s12 = smov [#allocation4]   ;;  %s1036_s16 = scalar_lea.hbm %s1242_s1, 12288 }
   0x2   :  { %s25_s13 = sshll.u32 %s1106_s12, 4  ;;  %p1037_p0 = scmp.ne.s32.totalorder %s1242_s1, %s1036_s16  ;;  %s26_s13 = int_to_ptr.vmem [resolvable:$true] %s25_s13 }
   0x3   :  { %p1040_p1 = scmp.lt.u32.totalorder %s1036_s16, %s1242_s1 }
   0x5   :  { %p1042_p2 = pnand %p1040_p1, %p1037_p0 }
   0x7   :  { %1045 = shalt.err (!%p1042_p2)
}
   0x8   :  { %s1046_s21 = scalar_lea.vmem %s26_s13, 12288  ;;  %p1051_p4 = scmp.lt.s32.totalorder %s26_s13, %s26_s13 }
   0x9   :  { %p1047_p3 = scmp.ne.s32.totalorder %s26_s13, %s1046_s21  ;;  %p1052_p5 = scmp.lt.s32.totalorder %s1046_s21, %s1046_s21 }
   0xb   :  { %p1053_p6 = por %p1052_p5, %p1051_p4 }
   0xd   :  { %p1054_p7 = pnand %p1053_p6, %p1047_p3 }
   0xf   :  { %1057 = shalt.err (!%p1054_p7)
}
  0x10   :  { %s1107_s22 = smov 128   ;;  %s1108_s23 = smov 8  }
  0x11   :  { %31 = dma.hbm_to_vmem [thread:$0]  %s1242_s1, 12288, %s26_s13, [#allocation5], %s1107_s22, %s1107_s22, %s1108_s23  }
  0x12   :  { %s1109_s26 = smov [#allocation2]   ;;  %s1110_s28 = smov [#allocation6]  }
  0x13   :  { %s16_s27 = sshll.u32 %s1109_s26, 4  ;;  %s37_s29 = sshll.u32 %s1110_s28, 4  ;;  %s17_s27 = int_to_ptr.vmem [resolvable:$true] %s16_s27  ;;  %s38_s29 = int_to_ptr.vmem [resolvable:$true] %s37_s29 }
  0x14   :  { %s1058_s5 = scalar_lea.hbm %s1241_s0, 128 }
  0x15   :  { %p1059_p8 = scmp.ne.s32.totalorder %s1241_s0, %s1058_s5  ;;  %p1062_p9 = scmp.lt.u32.totalorder %s1058_s5, %s1241_s0 }
  0x17   :  { %p1064_p10 = pnand %p1062_p9, %p1059_p8 }
  0x19   :  { %1067 = shalt.err (!%p1064_p10)
}
  0x1a   :  { %s1068_s1 = scalar_lea.vmem %s17_s27, 128  ;;  %p1073_p12 = scmp.lt.s32.totalorder %s17_s27, %s17_s27 }
  0x1b   :  { %p1069_p11 = scmp.ne.s32.totalorder %s17_s27, %s1068_s1  ;;  %p1074_p13 = scmp.lt.s32.totalorder %s1068_s1, %s1068_s1 }
  0x1d   :  { %p1075_p0 = por %p1074_p13, %p1073_p12 }
  0x1f   :  { %p1076_p1 = pnand %p1075_p0, %p1069_p11 }
  0x21   :  { %1079 = shalt.err (!%p1076_p1)
}
  0x22   :  { %19 = dma.hbm_to_vmem [thread:$0]  %s1241_s0, 128, %s17_s27, [#allocation3]  }
  0x23   :  { %s1080_s14 = scalar_lea.hbm %s1243_s2, 768 }
  0x24   :  { %p1081_p2 = scmp.ne.s32.totalorder %s1243_s2, %s1080_s14  ;;  %p1084_p3 = scmp.lt.u32.totalorder %s1080_s14, %s1243_s2 }
  0x26   :  { %p1086_p4 = pnand %p1084_p3, %p1081_p2 }
  0x28   :  { %1089 = shalt.err (!%p1086_p4)
}
  0x29   :  { %s1090_s19 = scalar_lea.vmem %s38_s29, 768  ;;  %p1095_p6 = scmp.lt.s32.totalorder %s38_s29, %s38_s29 }
  0x2a   :  { %p1091_p5 = scmp.ne.s32.totalorder %s38_s29, %s1090_s19  ;;  %p1096_p7 = scmp.lt.s32.totalorder %s1090_s19, %s1090_s19 }
  0x2c   :  { %p1097_p8 = por %p1096_p7, %p1095_p6 }
  0x2e   :  { %p1098_p9 = pnand %p1097_p8, %p1091_p5 }
  0x30   :  { %1101 = shalt.err (!%p1098_p9)
}
  0x31   :  { %43 = dma.hbm_to_vmem [thread:$0]  %s1243_s2, 768, %s38_s29, [#allocation5], %s1107_s22, %s1107_s22, %s1108_s23  }
  0x32   :  { %1102 = dma.done.wait [#allocation3], 128  }
  0x33   :  { %1103 = vsyncadd [#allocation3], 4294967168 }
  0x34   :  { %1104 = dma.done.wait [#allocation5], 13056  }
  0x35   :  { %1105 = vsyncadd [#allocation5], 4294954240  ;;  %v1111_v0 = vmov 0.0|0.0   ;;  %vm1112_vm0 = vmmov 0   ;;  %v1113_v1 = vmov 0.0   ;;  %v54_v2 = vld [vmem:[#allocation4] sm:$0xff]  ;;  %v59_v54 = vlaneseq }
  0x36   :  { %902 = vmatprep.subr.bf16.mxu0 %v1111_v0  ;;  %724 = vmatprep.mubr.msk.f32.mxu0 %vm1112_vm0, %v1113_v1  ;;  %v55_v3 = vld [vmem:[#allocation4 + $0x8] sm:$0xff]  ;;  %v56_v4 = vld [vmem:[#allocation4 + $0x10] sm:$0xff]  ;;  %v57_v6 = vld [vmem:[#allocation4 + $0x18] sm:$0xff]  ;;  %vm63_vm1 = vcmask 261120   ;;  %vm617_vm7 = vcmask 15360  }
  0x37   :  { %908 = vmatprep.subr.bf16.mxu1 %v1111_v0  ;;  %759 = vmatprep.mubr.msk.f32.mxu1 %vm1112_vm0, %v1113_v1  ;;  %v903_v5 = vpack.c.bf16 %v55_v3, %v54_v2  ;;  %v141_v7 = vld [vmem:[#allocation4 + $0x80] sm:$0xff]  ;;  %v142_v8 = vld [vmem:[#allocation4 + $0x88] sm:$0xff]  ;;  %v143_v9 = vld [vmem:[#allocation4 + $0x90] sm:$0xff]  ;;  %v906_v11 = vpack.c.bf16 %v57_v6, %v56_v4  ;;  %v60_v55 = vshrl.u32 %v59_v54, 7 }
  0x38   :  { %v144_v10 = vld [vmem:[#allocation4 + $0x98] sm:$0xff]  ;;  %v909_v12 = vpack.c.bf16 %v142_v8, %v141_v7  ;;  %v145_v14 = vld [vmem:[#allocation4 + $0xa0] sm:$0xff]  ;;  %v146_v15 = vld [vmem:[#allocation4 + $0xa8] sm:$0xff] }
  0x39   :  { %904 = vmatpush3.bf16.msra.mxu0 %v903_v5  ;;  %v912_v13 = vpack.c.bf16 %v144_v10, %v143_v9  ;;  %v53_v16 = vld [vmem:[#allocation2] sm:$0xff]  ;;  %v915_v17 = vpack.c.bf16 %v146_v15, %v145_v14  ;;  %v147_v18 = vld [vmem:[#allocation4 + $0xb0] sm:$0xff]  ;;  %v149_v21 = vld [vmem:[#allocation4 + $0xc0] sm:$0xff]  ;;  %v1201_v56 = vsub.s32 0, %v60_v55 }
  0x3a   :  { %905 = vmatprep.subr.bf16.mxu0 %v1111_v0  ;;  %910 = vmatpush3.bf16.msra.mxu1 %v909_v12  ;;  %v148_v19 = vld [vmem:[#allocation4 + $0xb8] sm:$0xff]  ;;  %v150_v22 = vld [vmem:[#allocation4 + $0xc8] sm:$0xff]  ;;  %v151_v24 = vld [vmem:[#allocation4 + $0xd0] sm:$0xff] }
  0x3b   :  { %911 = vmatprep.subr.bf16.mxu1 %v1111_v0  ;;  %v918_v20 = vpack.c.bf16 %v148_v19, %v147_v18  ;;  %v921_v23 = vpack.c.bf16 %v150_v22, %v149_v21  ;;  %v152_v25 = vld [vmem:[#allocation4 + $0xd8] sm:$0xff]  ;;  %v153_v27 = vld [vmem:[#allocation4 + $0xe0] sm:$0xff]  ;;  %v154_v28 = vld [vmem:[#allocation4 + $0xe8] sm:$0xff] }
  0x3c   :  { %v924_v26 = vpack.c.bf16 %v152_v25, %v151_v24  ;;  %v927_v29 = vpack.c.bf16 %v154_v28, %v153_v27  ;;  %v155_v30 = vld [vmem:[#allocation4 + $0xf0] sm:$0xff]  ;;  %v156_v31 = vld [vmem:[#allocation4 + $0xf8] sm:$0xff]  ;;  %v237_v33 = vld [vmem:[#allocation4 + $0x100] sm:$0xff] }
  0x3d   :  { %907 = vmatpush3.bf16.msra.mxu0 %v906_v11  ;;  %v930_v32 = vpack.c.bf16 %v156_v31, %v155_v30  ;;  %v238_v34 = vld [vmem:[#allocation4 + $0x108] sm:$0xff]  ;;  %v239_v35 = vld [vmem:[#allocation4 + $0x110] sm:$0xff]  ;;  %v240_v37 = vld [vmem:[#allocation4 + $0x118] sm:$0xff] }
  0x3e   :  { %932 = vmatprep.subr.bf16.mxu0 %v1111_v0  ;;  %913 = vmatpush3.bf16.msra.mxu1 %v912_v13  ;;  %v933_v36 = vpack.c.bf16 %v238_v34, %v237_v33  ;;  %v936_v38 = vpack.c.bf16 %v240_v37, %v239_v35  ;;  %v241_v39 = vld [vmem:[#allocation4 + $0x120] sm:$0xff]  ;;  %v242_v40 = vld [vmem:[#allocation4 + $0x128] sm:$0xff]  ;;  %v243_v42 = vld [vmem:[#allocation4 + $0x130] sm:$0xff] }
  0x3f   :  { %914 = vmatprep.subr.bf16.mxu1 %v1111_v0  ;;  %v939_v41 = vpack.c.bf16 %v242_v40, %v241_v39  ;;  %v244_v43 = vld [vmem:[#allocation4 + $0x138] sm:$0xff]  ;;  %v245_v45 = vld [vmem:[#allocation4 + $0x140] sm:$0xff]  ;;  %v246_v46 = vld [vmem:[#allocation4 + $0x148] sm:$0xff] }
  0x40   :  { %725 = vmatmul.mubr.msk.f32.vlgmr.msra.gmra.mrb[0].mxu0 %vm63_vm1, %v53_v16  ;;  %v942_v44 = vpack.c.bf16 %v244_v43, %v243_v42  ;;  %v945_v47 = vpack.c.bf16 %v246_v46, %v245_v45  ;;  %v247_v48 = vld [vmem:[#allocation4 + $0x150] sm:$0xff]  ;;  %v248_v49 = vld [vmem:[#allocation4 + $0x158] sm:$0xff]  ;;  %v249_v51 = vld [vmem:[#allocation4 + $0x160] sm:$0xff] }
  0x41   :  { %794 = vmatprep.mubr.msk.f32.mxu0 %vm1112_vm0, %v1113_v1  ;;  %934 = vmatpush3.bf16.msra.mxu0 %v933_v36  ;;  %v948_v50 = vpack.c.bf16 %v248_v49, %v247_v48  ;;  %v250_v52 = vld [vmem:[#allocation4 + $0x168] sm:$0xff]  ;;  %v58_v57 = vld [vmem:[#allocation6] sm:$0xff]  ;;  %v251_v2 = vld [vmem:[#allocation4 + $0x170] sm:$0xff] }
  0x42   :  { %916 = vmatpush3.bf16.msra.mxu1 %v915_v17  ;;  %935 = vmatprep.subr.bf16.mxu0 %v1111_v0  ;;  %v951_v53 = vpack.c.bf16 %v250_v52, %v249_v51  ;;  %v62_v58 = vrot.slane %v58_v57, %v1201_v56  ;;  %v252_v3 = vld [vmem:[#allocation4 + $0x178] sm:$0xff]  ;;  %v333_v5 = vld [vmem:[#allocation4 + $0x180] sm:$0xff]  ;;  %v334_v6 = vld [vmem:[#allocation4 + $0x188] sm:$0xff] }
  0x43   :  { %917 = vmatprep.subr.bf16.mxu1 %v1111_v0  ;;  %v954_v4 = vpack.c.bf16 %v252_v3, %v251_v2  ;;  %v335_v7 = vld [vmem:[#allocation4 + $0x190] sm:$0xff]  ;;  %v957_v8 = vpack.c.bf16 %v334_v6, %v333_v5  ;;  %v336_v9 = vld [vmem:[#allocation4 + $0x198] sm:$0xff]  ;;  %v337_v11 = vld [vmem:[#allocation4 + $0x1a0] sm:$0xff] }
  0x44   :  { %v960_v10 = vpack.c.bf16 %v336_v9, %v335_v7  ;;  %v338_v12 = vld [vmem:[#allocation4 + $0x1a8] sm:$0xff]  ;;  %v339_v14 = vld [vmem:[#allocation4 + $0x1b0] sm:$0xff]  ;;  %v340_v15 = vld [vmem:[#allocation4 + $0x1b8] sm:$0xff] }
  0x45   :  { %937 = vmatpush3.bf16.msra.mxu0 %v936_v38  ;;  %v963_v13 = vpack.c.bf16 %v338_v12, %v337_v11  ;;  %v966_v16 = vpack.c.bf16 %v340_v15, %v339_v14  ;;  %v341_v17 = vld [vmem:[#allocation4 + $0x1c0] sm:$0xff]  ;;  %v342_v18 = vld [vmem:[#allocation4 + $0x1c8] sm:$0xff]  ;;  %v344_v21 = vld [vmem:[#allocation4 + $0x1d8] sm:$0xff] }
  0x46   :  { %919 = vmatpush3.bf16.msra.mxu1 %v918_v20  ;;  %938 = vmatprep.subr.bf16.mxu0 %v1111_v0  ;;  %v969_v19 = vpack.c.bf16 %v342_v18, %v341_v17  ;;  %v343_v20 = vld [vmem:[#allocation4 + $0x1d0] sm:$0xff]  ;;  %v346_v24 = vld [vmem:[#allocation4 + $0x1e8] sm:$0xff]  ;;  %v348_v34 = vld [vmem:[#allocation4 + $0x1f8] sm:$0xff] }
  0x47   :  { %920 = vmatprep.subr.bf16.mxu1 %v1111_v0  ;;  %v972_v22 = vpack.c.bf16 %v344_v21, %v343_v20  ;;  %v347_v33 = vld [vmem:[#allocation4 + $0x1f0] sm:$0xff]  ;;  %v429_v36 = vld [vmem:[#allocation4 + $0x200] sm:$0xff]  ;;  %v430_v37 = vld [vmem:[#allocation4 + $0x208] sm:$0xff] }
  0x48   :  { %v978_v35 = vpack.c.bf16 %v348_v34, %v347_v33  ;;  %v431_v38 = vld [vmem:[#allocation4 + $0x210] sm:$0xff]  ;;  %v981_v39 = vpack.c.bf16 %v430_v37, %v429_v36  ;;  %v432_v40 = vld [vmem:[#allocation4 + $0x218] sm:$0xff]  ;;  %v433_v42 = vld [vmem:[#allocation4 + $0x220] sm:$0xff] }
  0x49   :  { %940 = vmatpush3.bf16.msra.mxu0 %v939_v41  ;;  %v984_v41 = vpack.c.bf16 %v432_v40, %v431_v38  ;;  %v434_v43 = vld [vmem:[#allocation4 + $0x228] sm:$0xff]  ;;  %v435_v45 = vld [vmem:[#allocation4 + $0x230] sm:$0xff]  ;;  %v436_v46 = vld [vmem:[#allocation4 + $0x238] sm:$0xff] }
  0x4a   :  { %922 = vmatpush3.bf16.msra.mxu1 %v921_v23  ;;  %941 = vmatprep.subr.bf16.mxu0 %v1111_v0  ;;  %v345_v23 = vld [vmem:[#allocation4 + $0x1e0] sm:$0xff]  ;;  %v438_v49 = vld [vmem:[#allocation4 + $0x248] sm:$0xff]  ;;  %v439_v51 = vld [vmem:[#allocation4 + $0x250] sm:$0xff] }
  0x4b   :  { %923 = vmatprep.subr.bf16.mxu1 %v1111_v0  ;;  %v975_v25 = vpack.c.bf16 %v346_v24, %v345_v23  ;;  %v437_v48 = vld [vmem:[#allocation4 + $0x240] sm:$0xff]  ;;  %v440_v52 = vld [vmem:[#allocation4 + $0x258] sm:$0xff]  ;;  %v442_v55 = vld [vmem:[#allocation4 + $0x268] sm:$0xff] }
  0x4c   :  { %v441_v54 = vld [vmem:[#allocation4 + $0x260] sm:$0xff]  ;;  %v443_v3 = vld [vmem:[#allocation4 + $0x270] sm:$0xff]  ;;  %v526_v7 = vld [vmem:[#allocation4 + $0x288] sm:$0xff] }
  0x4d   :  { %943 = vmatpush3.bf16.msra.mxu0 %v942_v44  ;;  %v987_v44 = vpack.c.bf16 %v434_v43, %v433_v42  ;;  %v999_v57 = vpack.c.bf16 %v442_v55, %v441_v54  ;;  %v525_v6 = vld [vmem:[#allocation4 + $0x280] sm:$0xff]  ;;  %v532_v15 = vld [vmem:[#allocation4 + $0x2b8] sm:$0xff]  ;;  %v534_v18 = vld [vmem:[#allocation4 + $0x2c8] sm:$0xff] }
  0x4e   :  { %925 = vmatpush3.bf16.msra.mxu1 %v924_v26  ;;  %944 = vmatprep.subr.bf16.mxu0 %v1111_v0  ;;  %v158_v26 = vld [vmem:[#allocation6 + $0x8] sm:$0xff]  ;;  %v1005_v9 = vpack.c.bf16 %v526_v7, %v525_v6  ;;  %v529_v12 = vld [vmem:[#allocation4 + $0x2a0] sm:$0xff]  ;;  %v535_v20 = vld [vmem:[#allocation4 + $0x2d0] sm:$0xff] }
  0x4f   :  { %926 = vmatprep.subr.bf16.mxu1 %v1111_v0  ;;  %v162_v27 = vrot.slane %v158_v26, %v1201_v56  ;;  %v533_v17 = vld [vmem:[#allocation4 + $0x2c0] sm:$0xff]  ;;  %v536_v21 = vld [vmem:[#allocation4 + $0x2d8] sm:$0xff]  ;;  %v538_v24 = vld [vmem:[#allocation4 + $0x2e8] sm:$0xff] }
  0x50   :  { %v537_v23 = vld [vmem:[#allocation4 + $0x2e0] sm:$0xff]  ;;  %v350_v26 = vld [vmem:[#allocation6 + $0x18] sm:$0xff]  ;;  %v539_v33 = vld [vmem:[#allocation4 + $0x2f0] sm:$0xff] }
  0x51   :  { %946 = vmatpush3.bf16.msra.mxu0 %v945_v47  ;;  %v990_v47 = vpack.c.bf16 %v436_v46, %v435_v45  ;;  %v540_v34 = vld [vmem:[#allocation4 + $0x2f8] sm:$0xff]  ;;  %v446_v36 = vld [vmem:[#allocation6 + $0x20] sm:$0xff]  ;;  %v542_v42 = vld [vmem:[#allocation6 + $0x28] sm:$0xff] }
  0x52   :  { %928 = vmatpush3.bf16.msra.mxu1 %v927_v29  ;;  %947 = vmatprep.subr.bf16.mxu0 %v1111_v0  ;;  %v450_v37 = vrot.slane %v446_v36, %v1201_v56  ;;  %v546_v43 = vrot.slane %v542_v42, %v1201_v56 }
  0x53   :  { %929 = vmatprep.subr.bf16.mxu1 %v1111_v0 }
  0x55   :  { %949 = vmatpush3.bf16.msra.mxu0 %v948_v50  ;;  %v993_v50 = vpack.c.bf16 %v438_v49, %v437_v48 }
  0x56   :  { %931 = vmatpush3.bf16.msra.mxu1 %v930_v32  ;;  %950 = vmatprep.subr.bf16.mxu0 %v1111_v0 }
  0x57   :  { %956 = vmatprep.subr.bf16.mxu1 %v1111_v0 }
  0x59   :  { %952 = vmatpush3.bf16.msra.mxu0 %v951_v53  ;;  %v996_v53 = vpack.c.bf16 %v440_v52, %v439_v51 }
  0x5a   :  { %953 = vmatprep.subr.bf16.mxu0 %v1111_v0 }
  0x5d   :  { %955 = vmatpush3.bf16.msra.mxu0 %v954_v4  ;;  %v444_v4 = vld [vmem:[#allocation4 + $0x278] sm:$0xff] }
  0x5e   :  { %980 = vmatprep.subr.bf16.mxu0 %v1111_v0  ;;  %v1002_v5 = vpack.c.bf16 %v444_v4, %v443_v3 }
 0x113   :  { %v133_v59 = vpop.f32.mrb[0].mxu0 }
 0x114   :  { %v134_v60 = vadd.f32 %v133_v59, %v62_v58  ;;  %v726_v61 = vpop.f32.mrb[1].mxu0  ;;  %v254_v58 = vld [vmem:[#allocation6 + $0x10] sm:$0xff] }
 0x115   :  { %v258_v59 = vrot.slane %v254_v58, %v1201_v56 }
 0x116   :  { %v138_v62 = vmul.f32 0.01, %v134_v60  ;;  %vm137_vm2 = vcmp.ge.f32.partialorder %v134_v60, 0.0 }
 0x118   :  { %v139_v63 = vsel %vm137_vm2, %v134_v60, %v138_v62 }
 0x119   :  { %760 = vmatmul.mubr.f32.vlgmr.msra.gmra.mrb[0].mxu1 %v139_v63 }
 0x11a   :  { %829 = vmatprep.mubr.msk.f32.mxu1 %vm1112_vm0, %v1113_v1  ;;  %958 = vmatpush3.bf16.msra.mxu1 %v957_v8  ;;  %v527_v8 = vld [vmem:[#allocation4 + $0x290] sm:$0xff] }
 0x11b   :  { %959 = vmatprep.subr.bf16.mxu1 %v1111_v0 }
 0x11e   :  { %961 = vmatpush3.bf16.msra.mxu1 %v960_v10  ;;  %v528_v10 = vld [vmem:[#allocation4 + $0x298] sm:$0xff] }
 0x11f   :  { %962 = vmatprep.subr.bf16.mxu1 %v1111_v0  ;;  %v1008_v11 = vpack.c.bf16 %v528_v10, %v527_v8 }
 0x122   :  { %964 = vmatpush3.bf16.msra.mxu1 %v963_v13  ;;  %v530_v13 = vld [vmem:[#allocation4 + $0x2a8] sm:$0xff] }
 0x123   :  { %965 = vmatprep.subr.bf16.mxu1 %v1111_v0  ;;  %v1011_v14 = vpack.c.bf16 %v530_v13, %v529_v12 }
 0x126   :  { %967 = vmatpush3.bf16.msra.mxu1 %v966_v16 }
 0x127   :  { %968 = vmatprep.subr.bf16.mxu1 %v1111_v0 }
 0x12a   :  { %970 = vmatpush3.bf16.msra.mxu1 %v969_v19  ;;  %v1017_v19 = vpack.c.bf16 %v534_v18, %v533_v17 }
 0x12b   :  { %971 = vmatprep.subr.bf16.mxu1 %v1111_v0 }
 0x12e   :  { %973 = vmatpush3.bf16.msra.mxu1 %v972_v22  ;;  %v1020_v22 = vpack.c.bf16 %v536_v21, %v535_v20 }
 0x12f   :  { %974 = vmatprep.subr.bf16.mxu1 %v1111_v0 }
 0x132   :  { %976 = vmatpush3.bf16.msra.mxu1 %v975_v25  ;;  %v1023_v25 = vpack.c.bf16 %v538_v24, %v537_v23 }
 0x133   :  { %977 = vmatprep.subr.bf16.mxu1 %v1111_v0 }
 0x136   :  { %979 = vmatpush3.bf16.msra.mxu1 %v978_v35  ;;  %v1026_v35 = vpack.c.bf16 %v540_v34, %v539_v33 }
 0x137   :  { %1004 = vmatprep.subr.bf16.mxu1 %v1111_v0 }
 0x1ec   :  { %v229_v28 = vpop.f32.mrb[0].mxu1 }
 0x1ed   :  { %v230_v29 = vadd.f32 %v229_v28, %v162_v27  ;;  %v761_v30 = vpop.f32.mrb[1].mxu1  ;;  %v354_v27 = vrot.slane %v350_v26, %v1201_v56 }
 0x1ef   :  { %vm233_vm3 = vcmp.ge.f32.partialorder %v230_v29, 0.0  ;;  %v234_v31 = vmul.f32 0.01, %v230_v29 }
 0x1f1   :  { %v235_v32 = vsel %vm233_vm3, %v230_v29, %v234_v31 }
 0x1f2   :  { %795 = vmatmul.mubr.f32.vlgmr.msra.gmra.mrb[2].mxu0 %v235_v32 }
 0x1f3   :  { %864 = vmatprep.mubr.msk.f32.mxu0 %vm1112_vm0, %v1113_v1  ;;  %982 = vmatpush3.bf16.msra.mxu0 %v981_v39 }
 0x1f4   :  { %983 = vmatprep.subr.bf16.mxu0 %v1111_v0 }
 0x1f7   :  { %985 = vmatpush3.bf16.msra.mxu0 %v984_v41 }
 0x1f8   :  { %986 = vmatprep.subr.bf16.mxu0 %v1111_v0 }
 0x1fb   :  { %988 = vmatpush3.bf16.msra.mxu0 %v987_v44 }
 0x1fc   :  { %989 = vmatprep.subr.bf16.mxu0 %v1111_v0 }
 0x1ff   :  { %991 = vmatpush3.bf16.msra.mxu0 %v990_v47 }
 0x200   :  { %992 = vmatprep.subr.bf16.mxu0 %v1111_v0 }
 0x203   :  { %994 = vmatpush3.bf16.msra.mxu0 %v993_v50 }
 0x204   :  { %995 = vmatprep.subr.bf16.mxu0 %v1111_v0 }
 0x207   :  { %997 = vmatpush3.bf16.msra.mxu0 %v996_v53 }
 0x208   :  { %998 = vmatprep.subr.bf16.mxu0 %v1111_v0 }
 0x20b   :  { %1000 = vmatpush3.bf16.msra.mxu0 %v999_v57 }
 0x20c   :  { %1001 = vmatprep.subr.bf16.mxu0 %v1111_v0 }
 0x20f   :  { %1003 = vmatpush3.bf16.msra.mxu0 %v1002_v5 }
 0x2c5   :  { %v325_v60 = vpop.f32.mrb[2].mxu0 }
 0x2c6   :  { %v326_v61 = vadd.f32 %v325_v60, %v258_v59  ;;  %v796_v62 = vpop.f32.mrb[3].mxu0 }
 0x2c8   :  { %vm329_vm4 = vcmp.ge.f32.partialorder %v326_v61, 0.0  ;;  %v330_v63 = vmul.f32 0.01, %v326_v61 }
 0x2ca   :  { %v331_v2 = vsel %vm329_vm4, %v326_v61, %v330_v63 }
 0x2cb   :  { %830 = vmatmul.mubr.f32.vlgmr.msra.gmra.mrb[2].mxu1 %v331_v2 }
 0x2cc   :  { %899 = vmatprep.mubr.msk.f32.mxu1 %vm1112_vm0, %v1113_v1  ;;  %1006 = vmatpush3.bf16.msra.mxu1 %v1005_v9  ;;  %v531_v1 = vld [vmem:[#allocation4 + $0x2b0] sm:$0xff] }
 0x2cd   :  { %1007 = vmatprep.subr.bf16.mxu1 %v1111_v0  ;;  %v1014_v16 = vpack.c.bf16 %v532_v15, %v531_v1 }
 0x2d0   :  { %1009 = vmatpush3.bf16.msra.mxu1 %v1008_v11 }
 0x2d1   :  { %1010 = vmatprep.subr.bf16.mxu1 %v1111_v0 }
 0x2d4   :  { %1012 = vmatpush3.bf16.msra.mxu1 %v1011_v14 }
 0x2d5   :  { %1013 = vmatprep.subr.bf16.mxu1 %v1111_v0 }
 0x2d8   :  { %1015 = vmatpush3.bf16.msra.mxu1 %v1014_v16 }
 0x2d9   :  { %1016 = vmatprep.subr.bf16.mxu1 %v1111_v0 }
 0x2dc   :  { %1018 = vmatpush3.bf16.msra.mxu1 %v1017_v19 }
 0x2dd   :  { %1019 = vmatprep.subr.bf16.mxu1 %v1111_v0 }
 0x2e0   :  { %1021 = vmatpush3.bf16.msra.mxu1 %v1020_v22 }
 0x2e1   :  { %1022 = vmatprep.subr.bf16.mxu1 %v1111_v0 }
 0x2e4   :  { %1024 = vmatpush3.bf16.msra.mxu1 %v1023_v25 }
 0x2e5   :  { %1025 = vmatprep.subr.bf16.mxu1 %v1111_v0 }
 0x2e8   :  { %1027 = vmatpush3.bf16.msra.mxu1 %v1026_v35 }
 0x39e   :  { %v421_v28 = vpop.f32.mrb[2].mxu1 }
 0x39f   :  { %v422_v29 = vadd.f32 %v421_v28, %v354_v27  ;;  %v831_v30 = vpop.f32.mrb[3].mxu1 }
 0x3a1   :  { %vm425_vm5 = vcmp.ge.f32.partialorder %v422_v29, 0.0  ;;  %v426_v31 = vmul.f32 0.01, %v422_v29 }
 0x3a3   :  { %v427_v32 = vsel %vm425_vm5, %v422_v29, %v426_v31 }
 0x3a4   :  { %865 = vmatmul.mubr.f32.vlgmr.msra.gmra.mrb[4].mxu0 %v427_v32 }
 0x477   :  { %v517_v38 = vpop.f32.mrb[4].mxu0 }
 0x478   :  { %v518_v39 = vadd.f32 %v517_v38, %v450_v37  ;;  %v866_v0 = vpop.f32.mrb[5].mxu0 }
 0x47a   :  { %vm521_vm6 = vcmp.ge.f32.partialorder %v518_v39, 0.0  ;;  %v522_v40 = vmul.f32 0.01, %v518_v39 }
 0x47c   :  { %v523_v41 = vsel %vm521_vm6, %v518_v39, %v522_v40 }
 0x47d   :  { %900 = vmatmul.mubr.f32.vlgmr.msra.gmra.mrb[4].mxu1 %v523_v41 }
 0x550   :  { %v613_v44 = vpop.f32.mrb[4].mxu1 }
 0x551   :  { %v614_v45 = vadd.f32 %v613_v44, %v546_v43  ;;  %v901_v46 = vpop.f32.mrb[5].mxu1 }
 0x553   :  { %618 = vst.msk [vmem:[%s1244_s3] sm:$0xff] %vm617_vm7, %v614_v45 }
 0x554   :  { %623 = vsyncpa [#allocation3], 1 }
 0x555   :  { %624 = vsyncpa [#allocation5], 1 }

</bundles_post_ra>
